<compile_context>
chip_gen: v6e
topology: v6e:2x2x1
jax: 0.10.0
libtpu: 0.0.40
codegen_flags: <defaults>
</compile_context>

<pallas_src>
import math

import jax
import jax.numpy as jnp
from jax.experimental import pallas as pl
from jax.experimental.pallas import tpu as pltpu


# ---------------------------------------------------------------------------
# Parameter / buffer construction (glue, plain JAX — mirrors __init__)
# ---------------------------------------------------------------------------
def make_positional_encoding(max_seq_len: int, d_model: int,
                             dtype=jnp.float32) -> jax.Array:
    """Builds the (1, max_seq_len, d_model) sin/cos table (batch_first=True)."""
    position = jnp.arange(max_seq_len, dtype=jnp.float32)[:, None]       # (L, 1)
    div_term = jnp.exp(
        jnp.arange(0, d_model, 2, dtype=jnp.float32) *
        (-math.log(10000.0) / d_model))                                  # (D/2,)
    angles = position * div_term                                         # (L, D/2)
    pe = jnp.zeros((1, max_seq_len, d_model), dtype=jnp.float32)
    pe = pe.at[0, :, 0::2].set(jnp.sin(angles))
    pe = pe.at[0, :, 1::2].set(jnp.cos(angles))
    return pe.astype(dtype)


# ---------------------------------------------------------------------------
# Small helpers
# ---------------------------------------------------------------------------
def _round_up(n: int, m: int) -> int:
    return ((n + m - 1) // m) * m


def _tile_vmem_bytes(shape, itemsize: int) -> int:
    """VMEM footprint of one tile, including (8, 128) padding of the last two
    dims (approximate for sub-32-bit dtypes; conservative enough)."""
    dims = list(shape)
    if len(dims) >= 2:
        dims[-1] = _round_up(dims[-1], 128)
        dims[-2] = _round_up(dims[-2], 8)
    n = 1
    for d in dims:
        n *= int(d)
    return n * itemsize


def _vmem_capacity_bytes() -> int:
    """Generation-aware VMEM capacity; conservative fallback is v7x (64 MiB)."""
    try:
        cap = int(getattr(pltpu.get_tpu_info(), "vmem_capacity_bytes", 0))
        if cap > 0:
            return cap
    except Exception:
        pass
    return 64 << 20


# ---------------------------------------------------------------------------
# Pallas kernel: broadcast add of the positional table onto x
# ---------------------------------------------------------------------------
def _pe_add_kernel(x_ref, pe_ref, o_ref):
    # x_ref : (rows, cols) or (bt, ts, D) tile of x
    # pe_ref: (1,    cols) or (1,  ts, D) tile of pe -> broadcast over batch
    # Compute in the promoted output dtype (matches PyTorch type promotion);
    # eval-mode dropout is identity.
    o_ref[...] = x_ref[...].astype(o_ref.dtype) + pe_ref[...].astype(o_ref.dtype)


# ---------------------------------------------------------------------------
# Wrapper
# ---------------------------------------------------------------------------
def positional_encoder_forward(x: jax.Array, pe: jax.Array,
                               *, donate_x: bool = False) -> jax.Array:
    """Replicates PositionalEncoder.forward (batch_first=True, eval mode).

    x : (B, S, D)
    pe: (1, max_seq_len, D)
    donate_x: alias x's buffer to the output (only valid if the caller does
              not need x afterwards and dtypes match).
    """
    B, S, D = x.shape
    # PyTorch: x + self.pe[:x.size(1)] slices the size-1 batch axis of pe and
    # returns pe itself, so the broadcast add requires S == max_seq_len.
    pe_sliced = pe[: min(S, pe.shape[0])]
    assert pe_sliced.shape[0] == 1 and pe_sliced.shape[2] == D
    assert S == pe.shape[1], (
        "Broadcast add requires seq_len == max_seq_len (same as PyTorch).")

    # TODO(synk): training-mode dropout (mask + 1/(1-p) scaling via
    # pltpu.prng_random_bits) not implemented; eval-mode dropout is identity.

    out_dtype = jnp.promote_types(x.dtype, pe.dtype)     # PyTorch promotion
    x_isz = jnp.dtype(x.dtype).itemsize
    pe_isz = jnp.dtype(pe.dtype).itemsize
    o_isz = jnp.dtype(out_dtype).itemsize

    vmem_cap = _vmem_capacity_bytes()
    # ~4 MiB x-tiles on 64 MiB-VMEM parts (v7x), ~8 MiB on 128 MiB parts.
    target_bytes = (4 << 20) if vmem_cap <= (64 << 20) else (8 << 20)

    F = S * D
    # Flatten only when it buys lane density that the natural layout lacks.
    use_flat = (D % 128 != 0) and (F % 128 == 0)

    if use_flat:
        # -------- flat (B, S*D) layout: lane-dense columns ------------------
        x_in = x.reshape(B, F)
        pe_in = pe_sliced.reshape(1, F)

        cols = min(F, max(128, (target_bytes // (8 * x_isz)) // 128 * 128))
        if B % 8 == 0:
            rows = 8
            while B % (rows * 2) == 0 and rows * 2 * cols * x_isz <= 2 * target_bytes:
                rows *= 2
        else:
            rows = min(B, 8)      # B < 8 -> full extent; else 8 + ragged tail

        grid = (pl.cdiv(F, cols), pl.cdiv(B, rows))       # batch/rows innermost
        in_specs = [
            pl.BlockSpec((rows, cols), lambda c, r: (r, c)),
            # pe depends only on the column tile -> stays resident across the
            # inner (batch-row) axis, no re-DMA per batch.
            pl.BlockSpec((1, cols), lambda c, r: (0, c)),
        ]
        out_spec = pl.BlockSpec((rows, cols), lambda c, r: (r, c))
        out_shape = jax.ShapeDtypeStruct((B, F), out_dtype)
        tile_bytes = (_tile_vmem_bytes((rows, cols), x_isz)
                      + _tile_vmem_bytes((1, cols), pe_isz)
                      + _tile_vmem_bytes((rows, cols), o_isz))
    else:
        # -------- 3D (B, S, D) layout: full-sublane (bt, ts, D) tiles --------
        x_in = x
        pe_in = pe_sliced

        row_bytes = D * x_isz
        if S * row_bytes <= target_bytes or S <= 8:
            ts = S                                       # full extent (legal)
        else:
            ts = max(8, (target_bytes // row_bytes) // 8 * 8)   # multiple of 8
        bt = min(B, max(1, target_bytes // max(1, ts * row_bytes)))
        while bt > 1 and B % bt:                         # keep leading dim even
            bt -= 1

        grid = (pl.cdiv(S, ts), B // bt)                 # batch innermost
        in_specs = [
            pl.BlockSpec((bt, ts, D), lambda s, b: (b, s, 0)),
            # pe depends only on the S tile -> resident across the batch axis.
            pl.BlockSpec((1, ts, D), lambda s, b: (0, s, 0)),
        ]
        out_spec = pl.BlockSpec((bt, ts, D), lambda s, b: (b, s, 0))
        out_shape = jax.ShapeDtypeStruct((B, S, D), out_dtype)
        tile_bytes = (_tile_vmem_bytes((bt, ts, D), x_isz)
                      + _tile_vmem_bytes((1, ts, D), pe_isz)
                      + _tile_vmem_bytes((bt, ts, D), o_isz))

    # Explicit VMEM budget: double-buffered in/out tiles plus headroom, capped
    # at 3/4 of the physical VMEM of this generation.
    needed = 2 * tile_bytes
    vmem_limit = int(min(max(needed + (8 << 20), 32 << 20), (vmem_cap * 3) // 4))
    vmem_limit = max(vmem_limit, needed + (2 << 20))

    io_aliases = {0: 0} if (donate_x and x.dtype == out_dtype) else {}

    out = pl.pallas_call(
        _pe_add_kernel,
        out_shape=out_shape,
        grid_spec=pltpu.PrefetchScalarGridSpec(
            num_scalar_prefetch=0,
            grid=grid,
            in_specs=in_specs,
            out_specs=out_spec,
        ),
        input_output_aliases=io_aliases,
        compiler_params=pltpu.CompilerParams(
            # Pure elementwise op, no accumulator -> both axes independent;
            # lets v7x megacore shard whichever axis is large.
            dimension_semantics=("parallel", "parallel"),
            vmem_limit_bytes=vmem_limit),
    )(x_in, pe_in)

    return out.reshape(B, S, D)


# ---------------------------------------------------------------------------
# Demo / self-test
# ---------------------------------------------------------------------------
if __name__ == "__main__":
    key = jax.random.PRNGKey(0)

    # Case 1: small d_model -> flat (B, S*D) lane-dense path.
    #   batch=2, seq=8, d_model=32, max_seq_len=8 (so the broadcast add works,
    #   exactly as it must in the original PyTorch module).
    B, S, D = 2, 8, 32
    x = jax.random.normal(key, (B, S, D), dtype=jnp.float32)
    pe = make_positional_encoding(S, D, dtype=jnp.float32)
    out = jax.block_until_ready(positional_encoder_forward(x, pe))
    ref = x + pe[: min(S, 1)]            # eval-mode dropout == identity
    assert out.shape == x.shape and out.dtype == ref.dtype
    assert jnp.allclose(out, ref, atol=1e-6, rtol=1e-6)

    # Case 2: lane-dense d_model -> 3D (bt, ts, D) path.
    B2, S2, D2 = 2, 8, 128
    x2 = jax.random.normal(jax.random.PRNGKey(0), (B2, S2, D2), dtype=jnp.float32)
    pe2 = make_positional_encoding(S2, D2, dtype=jnp.float32)
    out2 = jax.block_until_ready(positional_encoder_forward(x2, pe2))
    ref2 = x2 + pe2[: min(S2, 1)]
    assert out2.shape == x2.shape and out2.dtype == ref2.dtype
    assert jnp.allclose(out2, ref2, atol=1e-6, rtol=1e-6)

    print("KERNEL_OK")
</pallas_src>

<mosaic_0001>
module attributes {stable_mosaic.version = 11 : i64} {
  func.func @_pe_add_kernel(%arg0: i32, %arg1: i32, %arg2: memref<2x256xf32, #tpu.memory_space<vmem>>, %arg3: memref<1x256xf32, #tpu.memory_space<vmem>>, %arg4: memref<2x256xf32, #tpu.memory_space<vmem>>) attributes {dimension_semantics = [#tpu.dimension_semantics<parallel>, #tpu.dimension_semantics<parallel>], iteration_bounds = array<i64: 1, 1>, scalar_prefetch = 0 : i64, scratch_operands = 0 : i64, tpu.core_type = #tpu.core_type<tc>, window_params = [{transform_indices = @transform_0, window_bounds = array<i64: 2, 256>}, {transform_indices = @transform_1, window_bounds = array<i64: 1, 256>}, {transform_indices = @transform_2, window_bounds = array<i64: 2, 256>}]} {
    %c0 = arith.constant 0 : index
    %c0_0 = arith.constant 0 : index
    %0 = vector.load %arg2[%c0, %c0_0] : memref<2x256xf32, #tpu.memory_space<vmem>>, vector<2x256xf32>
    %c0_1 = arith.constant 0 : index
    %c0_2 = arith.constant 0 : index
    %1 = vector.load %arg3[%c0_1, %c0_2] : memref<1x256xf32, #tpu.memory_space<vmem>>, vector<1x256xf32>
    %2 = vector.broadcast %1 : vector<1x256xf32> to vector<2x256xf32>
    %3 = arith.addf %0, %2 : vector<2x256xf32>
    %c0_3 = arith.constant 0 : index
    %c0_4 = arith.constant 0 : index
    %4 = vector.load %arg4[%c0_3, %c0_4] : memref<2x256xf32, #tpu.memory_space<vmem>>, vector<2x256xf32>
    tpu.vector_store %arg4[%c0_3, %c0_4], %3 {strides = array<i32>} : memref<2x256xf32, #tpu.memory_space<vmem>>, vector<2x256xf32>,
    return
  }
  func.func @transform_0(%arg0: i32, %arg1: i32) -> (i32, i32) {
    %c0_i32 = arith.constant 0 : i32
    return %arg1, %arg0 : i32, i32
  }
  func.func @transform_1(%arg0: i32, %arg1: i32) -> (i32, i32) {
    %c0_i32 = arith.constant 0 : i32
    %c0_i32_0 = arith.constant 0 : i32
    return %c0_i32, %arg0 : i32, i32
  }
  func.func @transform_2(%arg0: i32, %arg1: i32) -> (i32, i32) {
    %c0_i32 = arith.constant 0 : i32
    return %arg1, %arg0 : i32, i32
  }
}

</mosaic_0001>

<bundles_post_ra>
// kernel: tpu_custom_call.1
= control target key start
LH: loop header
LB: loop body
LE: loop exit
PB: predicated region body
PF: predicated region fallthrough
CT: control target
= control target key end

     0   :  { %7 = vsyncpa [#allocation3], 0  ;;  %s172_s0 = inlined_call_operand.hbm [shape: f32[2,256], index: 0, kind: input, shape index: {}]   ;;  %s173_s1 = inlined_call_operand.hbm [shape: f32[1,256], index: 1, kind: input, shape index: {}]   ;;  %s174_s2 = inlined_call_operand.hbm [shape: f32[2,256], index: 2, kind: output, shape index: {}]  }
   0x1   :  { %8 = vsyncpa [#allocation6], 0 }
   0x2   :  { %9 = vsyncpa [#allocation4], 0  ;;  %s144_s9 = smov [#allocation2]   ;;  %s145_s11 = smov [#allocation5]  }
   0x3   :  { %s16_s10 = sshll.u32 %s144_s9, 4  ;;  %s26_s12 = sshll.u32 %s145_s11, 4  ;;  %s17_s10 = int_to_ptr.vmem [resolvable:$true] %s16_s10  ;;  %s27_s12 = int_to_ptr.vmem [resolvable:$true] %s26_s12 }
   0x4   :  { %s86_s13 = scalar_lea.vmem %s17_s10, 64  ;;  %p91_p1 = scmp.lt.s32.totalorder %s17_s10, %s17_s10 }
   0x5   :  { %p87_p0 = scmp.ne.s32.totalorder %s17_s10, %s86_s13  ;;  %p92_p2 = scmp.lt.s32.totalorder %s86_s13, %s86_s13 }
   0x7   :  { %p93_p3 = por %p92_p2, %p91_p1 }
   0x9   :  { %p94_p4 = pnand %p93_p3, %p87_p0 }
   0xb   :  { %97 = shalt.err (!%p94_p4)
}
   0xc   :  { %19 = dma.hbm_to_vmem [thread:$0]  %s172_s0, 64, %s17_s10, [#allocation3]  }
   0xd   :  { %s106_s16 = scalar_lea.vmem %s27_s12, 32  ;;  %p111_p6 = scmp.lt.s32.totalorder %s27_s12, %s27_s12 }
   0xe   :  { %p107_p5 = scmp.ne.s32.totalorder %s27_s12, %s106_s16  ;;  %p112_p7 = scmp.lt.s32.totalorder %s106_s16, %s106_s16 }
  0x10   :  { %p113_p8 = por %p112_p7, %p111_p6 }
  0x12   :  { %p114_p9 = pnand %p113_p8, %p107_p5 }
  0x14   :  { %117 = shalt.err (!%p114_p9)
}
  0x15   :  { %29 = dma.hbm_to_vmem [thread:$0]  %s173_s1, 32, %s27_s12, [#allocation6]  }
  0x16   :  { %138 = dma.done.wait [#allocation3], 64  }
  0x17   :  { %139 = vsyncadd [#allocation3], 4294967232 }
  0x18   :  { %140 = dma.done.wait [#allocation6], 32  }
  0x19   :  { %141 = vsyncadd [#allocation6], 4294967264  ;;  %v39_v0 = vlaneseq  ;;  %v146_v1 = vmov 1983009808   ;;  %v37_v7 = vld [vmem:[#allocation5] sm:$0x3] }
  0x1a   :  { %v49_v2 = vunpack.c.l.s4 %v146_v1  ;;  %v36_v12 = vld [vmem:[#allocation2] sm:$0xf]  ;;  %s147_s0 = smov [#allocation7]  }
  0x1b   :  { %v40_v3 = vshrl.u32 %v39_v0, 7  ;;  %s64_s19 = sshll.u32 %s147_s0, 4  ;;  %s65_s19 = int_to_ptr.vmem [resolvable:$true] %s64_s19 }
  0x1c   :  { %v50_v6 = vunpack.c.0.s8 %v49_v2  ;;  %s118_s1 = scalar_lea.vmem %s65_s19, 64  ;;  %p123_p11 = scmp.lt.s32.totalorder %s65_s19, %s65_s19 }
  0x1d   :  { %v41_v4 = vsub.s32 0, %v40_v3  ;;  %v45_v5 = vsub.s32 1, %v40_v3  ;;  %p119_p10 = scmp.ne.s32.totalorder %s65_s19, %s118_s1  ;;  %p124_p12 = scmp.lt.s32.totalorder %s118_s1, %s118_s1 }
  0x1e   :  { %v53_v10 = vsub.s32 %v50_v6, %v40_v3 }
  0x1f   :  { %v42_v8 = vrot.slane %v37_v7, %v41_v4  ;;  %v46_v9 = vrot.slane %v37_v7, %v45_v5  ;;  %p125_p13 = por %p124_p12, %p123_p11 }
  0x21   :  { %v47_v11 = vcombine.low %v42_v8, %v46_v9  ;;  %p126_p0 = pnand %p125_p13, %p119_p10 }
  0x23   :  { %v54_v13 = vrot.slane %v47_v11, %v53_v10 }
  0x25   :  { %v56_v14 = vadd.f32 %v54_v13, %v36_v12 }
  0x27   :  { %57 = vst [vmem:[#allocation7] sm:$0xf] %v56_v14 }
  0x28   :  { %129 = shalt.err (!%p126_p0)
}
  0x29   :  { %67 = dma.vmem_to_hbm [thread:$0]  %s65_s19, 64, %s174_s2, [#allocation4]  }
  0x2a   :  { %142 = dma.done.wait [#allocation4], 64  }
  0x2b   :  { %143 = vsyncadd [#allocation4], 4294967232 }
  0x2c   :  { %71 = vsyncpa [#allocation3], 1 }
  0x2d   :  { %72 = vsyncpa [#allocation6], 1 }
  0x2e   :  { %73 = vsyncpa [#allocation4], 1 }

</bundles_post_ra>
